<compile_context>
chip_gen: v5e
topology: v5e:2x2
jax: 0.10.0
libtpu: 0.0.40
codegen_flags: <defaults>
</compile_context>

<pallas_src>
import functools

import jax
import jax.numpy as jnp
import numpy as np
from jax.experimental import pallas as pl
from jax.experimental.pallas import tpu as pltpu


def conv_add_attention_kernel(
    rows_ref,   # [TILE_R, KCP]  bf16  packed im2col rows (G windows per row)
    ws_ref,     # [KCP, KCP]     bf16  block-diag *centered* score weights
    seg_ref,    # [KCP, KCP]     f32   group membership (per-window sum-broadcast)
    lnw_ref,    # [1, KCP]       f32   LayerNorm weight per (group, pos, chan) lane
    lnb_ref,    # [1, KCP]       f32   LayerNorm bias
    wp_ref,     # [KCP, OPAD]    bf16  block-diag projection weights
    bp_ref,     # [1, OPAD]      f32   projection bias tiled per group
    out_ref,    # [TILE_R, OPAD] f32
    *, kc, c, n_grp, eps,
):
    x = rows_ref[...]                                                    # bf16

    # Centered per-(window-pos, channel) scores.  ws_ref already folds the
    # per-window mean subtraction (and hence the score-bias cancellation).
    cent = jnp.dot(x, ws_ref[...], preferred_element_type=jnp.float32)  # [R, KCP] f32

    lane = jax.lax.broadcasted_iota(jnp.int32, cent.shape, 1)
    valid = lane < n_grp * kc

    # Per-window (biased) variance.  Each window position is duplicated C
    # times on the lane axis, so /kc == /k^2 over positions.  The seg matmul
    # broadcasts the per-window sum back onto every lane of its window.
    var = jnp.dot(cent * cent, seg_ref[...],
                  preferred_element_type=jnp.float32) * (1.0 / kc)
    normed = cent * jax.lax.rsqrt(var + eps) * lnw_ref[...] + lnb_ref[...]

    # Per-window max for a stable softmax (static unrolled loop over the
    # n_grp packed windows; n_grp is a small compile-time constant).
    m_lane = jnp.zeros_like(normed)
    for g in range(n_grp):
        gmask = (lane >= g * kc) & (lane < (g + 1) * kc)
        mg = jnp.max(jnp.where(gmask, normed, -jnp.inf), axis=-1, keepdims=True)
        m_lane = jnp.where(gmask, mg, m_lane)

    e = jnp.where(valid, jnp.exp(normed - m_lane), 0.0)
    # Per-window sum of exp (each position counted C times -> fold 1/C).
    denom = jnp.dot(e, seg_ref[...], preferred_element_type=jnp.float32) * (1.0 / c)
    w = e * pl.reciprocal(jnp.where(valid, denom, 1.0), approx=True)

    # Reassociated weighted projection: (sum_i w_i * x_i) @ Wp + bp per window
    # (softmax weights sum to 1, so the bias passes through).
    wx = (w * x.astype(jnp.float32)).astype(jnp.bfloat16)
    out = jnp.dot(wx, wp_ref[...], preferred_element_type=jnp.float32) + bp_ref[...]
    out_ref[...] = out.astype(out_ref.dtype)


def conv_add_attention(x, params, *, kernel_size, stride):
    """x: [N, C, H, W] float32 -> [N, O, nH, nW] float32."""
    N, C, H, W = x.shape
    k = kernel_size
    k2 = k * k
    kc = k2 * C
    O = params["w_proj"].shape[0]
    LANE = 128

    # torch.transpose(x, 1, 3) -> [N, W, H, C]
    x_t = jnp.transpose(x, (0, 3, 2, 1))

    h_starts = np.arange(0, H - k + 1, stride)
    w_starts = np.arange(0, W - k + 1, stride)
    nH, nW = len(h_starts), len(w_starts)
    P = nH * nW
    R_total = N * P

    # Vectorized im2col.  Window-row index = n*P + hi*nW + wi; lane-in-window =
    # (dw*k + dh)*C + c  (matches the PyTorch [:, w:w+k, h:h+k, :] reshape).
    Wi = jnp.asarray(w_starts)[None, :, None, None] + jnp.arange(k)[None, None, :, None]
    Hi = jnp.asarray(h_starts)[:, None, None, None] + jnp.arange(k)[None, None, None, :]
    gathered = x_t[:, Wi, Hi, :]                     # [N, nH, nW, k, k, C]
    rows = gathered.reshape(R_total, kc)

    # --- pack G windows per 128-lane row --------------------------------------
    kcp = LANE if kc <= LANE else ((kc + LANE - 1) // LANE) * LANE
    G = max(1, kcp // kc)          # windows packed per row (3 for kc=36)
    gkc = G * kc                   # valid input lanes per row
    go = G * O                     # valid output lanes per row
    opad = ((go + LANE - 1) // LANE) * LANE

    R_packed = -(-R_total // G)

    # Row tile: large (VMEM-budgeted, cap 1024) but split so the grid has >= 2
    # steps, letting the "parallel" axis use both TensorCores on v7x.
    # VMEM: ~(7 f32 temps + double-buffered in/out blocks) ~= 5 KiB/row
    # -> ~5 MiB at 1024 rows, well inside the explicit 32 MiB limit below.
    TILE_CAP = 1024
    tile_r = min(TILE_CAP, max(16, ((-(-R_packed // 2) + 15) // 16) * 16))
    r_pad = ((R_packed + tile_r - 1) // tile_r) * tile_r

    rows_g = jnp.pad(rows, ((0, R_packed * G - R_total), (0, 0))).reshape(R_packed, gkc)
    rows_p = jnp.pad(rows_g, ((0, r_pad - R_packed), (0, kcp - gkc))).astype(jnp.bfloat16)

    # --- block-diagonal constant matrices --------------------------------------
    a = np.arange(kcp)
    grp = a // kc                  # packed-window group of lane
    pos = (a % kc) // C            # window position of lane (< k2)
    chan = a % C                   # channel of lane
    lane_valid = a < gkc

    same_grp = (grp[:, None] == grp[None, :]) & lane_valid[:, None] & lane_valid[None, :]
    same_pos = same_grp & (pos[:, None] == pos[None, :])

    ws_vec = params["w_score"].reshape(C)
    ws_exp = jnp.where(jnp.asarray(same_pos), ws_vec[jnp.asarray(chan)][:, None], 0.0)
    seg = jnp.asarray(same_grp).astype(jnp.float32)                       # [kcp, kcp]
    # Fold the per-window mean subtraction (and score-bias cancellation) into
    # the score weights:  cent = x @ ws_exp @ (I - seg/kc).
    ws_cent = (ws_exp - jnp.dot(ws_exp, seg) / kc).astype(jnp.bfloat16)

    lnw_vec = params["ln_weight"].reshape(k2)
    lnb_vec = params["ln_bias"].reshape(k2)
    lane_valid_j = jnp.asarray(lane_valid)
    lnw_exp = jnp.where(lane_valid_j, lnw_vec[jnp.asarray(pos)], 0.0).reshape(1, kcp)
    lnb_exp = jnp.where(lane_valid_j, lnb_vec[jnp.asarray(pos)], 0.0).reshape(1, kcp)

    oc = np.arange(opad)
    out_grp = oc // O
    out_o = oc % O
    out_valid = oc < go
    wp_t = params["w_proj"].T                                             # [C, O]
    sel = (grp[:, None] == out_grp[None, :]) & lane_valid[:, None] & out_valid[None, :]
    wp_exp = jnp.where(jnp.asarray(sel),
                       wp_t[jnp.asarray(chan)][:, jnp.asarray(out_o)],
                       0.0).astype(jnp.bfloat16)                          # [kcp, opad]
    bp_exp = jnp.where(jnp.asarray(out_valid)[None, :],
                       params["b_proj"][jnp.asarray(out_o)][None, :], 0.0)  # [1, opad]

    kernel = functools.partial(conv_add_attention_kernel,
                               kc=kc, c=C, n_grp=G, eps=1e-5)

    out_rows = pl.pallas_call(
        kernel,
        out_shape=jax.ShapeDtypeStruct((r_pad, opad), jnp.float32),
        grid_spec=pltpu.PrefetchScalarGridSpec(
            num_scalar_prefetch=0,
            grid=(r_pad // tile_r,),
            in_specs=[
                pl.BlockSpec((tile_r, kcp), lambda r: (r, 0)),
                pl.BlockSpec((kcp, kcp), lambda r: (0, 0)),
                pl.BlockSpec((kcp, kcp), lambda r: (0, 0)),
                pl.BlockSpec((1, kcp), lambda r: (0, 0)),
                pl.BlockSpec((1, kcp), lambda r: (0, 0)),
                pl.BlockSpec((kcp, opad), lambda r: (0, 0)),
                pl.BlockSpec((1, opad), lambda r: (0, 0)),
            ],
            out_specs=pl.BlockSpec((tile_r, opad), lambda r: (r, 0)),
        ),
        compiler_params=pltpu.CompilerParams(
            dimension_semantics=("parallel",),
            vmem_limit_bytes=32 * 1024 * 1024,
        ),
    )(rows_p, ws_cent, seg, lnw_exp, lnb_exp, wp_exp, bp_exp)

    # Unpack: packed row r, slot g  <->  window index r*G + g.
    out = out_rows[:R_packed, :go].reshape(R_packed * G, O)[:R_total]
    out = out.reshape(N, nH, nW, O)
    return jnp.transpose(out, (0, 3, 1, 2))                               # [N, O, nH, nW]


def conv_add_attention_reference(x, params, *, kernel_size, stride):
    """Pure-JAX port of the PyTorch forward, for correctness checking."""
    N, C, H, W = x.shape
    k = kernel_size
    k2 = k * k
    O = params["w_proj"].shape[0]
    x_t = jnp.transpose(x, (0, 3, 2, 1))                                  # [N, W, H, C]
    proj_x = jnp.einsum("nwhc,oc->nwho", x_t, params["w_proj"]) + params["b_proj"]
    score_x = jnp.einsum("nwhc,oc->nwho", x_t, params["w_score"]) + params["b_score"]
    lnw = params["ln_weight"].reshape(k2, 1)
    lnb = params["ln_bias"].reshape(k2, 1)
    rows = []
    for h in range(0, H - k + 1, stride):
        cols = []
        for w in range(0, W - k + 1, stride):
            scores = score_x[:, w:w + k, h:h + k, :].reshape(N, k2, 1)
            projs = proj_x[:, w:w + k, h:h + k, :].reshape(N, k2, O)
            mean = jnp.mean(scores, axis=(1, 2), keepdims=True)
            var = jnp.mean((scores - mean) ** 2, axis=(1, 2), keepdims=True)
            normed = (scores - mean) / jnp.sqrt(var + 1e-5) * lnw + lnb
            weights = jax.nn.softmax(normed, axis=-2)
            cols.append(jnp.sum(projs * weights, axis=-2))                # [N, O]
        rows.append(jnp.stack(cols, axis=-1))                             # [N, O, nW]
    return jnp.stack(rows, axis=-2)                                       # [N, O, nH, nW]


if __name__ == "__main__":
    key = jax.random.PRNGKey(0)
    N, C, H, W = 2, 4, 16, 16
    O, K, S = 32, 3, 2

    k_x, k_wp, k_bp, k_ws, k_bs, k_lw, k_lb = jax.random.split(key, 7)
    x = jax.random.normal(k_x, (N, C, H, W), dtype=jnp.float32)
    params = {
        # torch.nn.Linear(input_size=C, output_size=O): weight [O, C], bias [O]
        "w_proj": jax.random.normal(k_wp, (O, C), dtype=jnp.float32) / np.sqrt(C),
        "b_proj": 0.1 * jax.random.normal(k_bp, (O,), dtype=jnp.float32),
        # torch.nn.Linear(input_size=C, 1): weight [1, C], bias [1]
        "w_score": jax.random.normal(k_ws, (1, C), dtype=jnp.float32) / np.sqrt(C),
        "b_score": 0.1 * jax.random.normal(k_bs, (1,), dtype=jnp.float32),
        # torch.nn.LayerNorm([K*K, 1]): weight/bias of shape [K*K, 1]
        "ln_weight": 1.0 + 0.1 * jax.random.normal(k_lw, (K * K, 1), dtype=jnp.float32),
        "ln_bias": 0.1 * jax.random.normal(k_lb, (K * K, 1), dtype=jnp.float32),
    }

    out = conv_add_attention(x, params, kernel_size=K, stride=S)
    out = jax.block_until_ready(out)

    ref = conv_add_attention_reference(x, params, kernel_size=K, stride=S)
    assert out.shape == (N, O, 7, 7), out.shape
    # Tolerance accounts for bf16 MXU inputs + approximate reciprocal (a real
    # indexing/algorithmic bug produces O(0.1-1) errors).
    max_err = float(jnp.max(jnp.abs(out - ref)))
    assert max_err < 5e-2, f"max abs error vs reference: {max_err}"

    print("KERNEL_OK")
</pallas_src>

<mosaic_0001>
module attributes {stable_mosaic.version = 11 : i64} {
  func.func @conv_add_attention_kernel(%arg0: i32, %arg1: memref<32x128xbf16, #tpu.memory_space<vmem>>, %arg2: memref<128x128xbf16, #tpu.memory_space<vmem>>, %arg3: memref<128x128xf32, #tpu.memory_space<vmem>>, %arg4: memref<1x128xf32, #tpu.memory_space<vmem>>, %arg5: memref<1x128xf32, #tpu.memory_space<vmem>>, %arg6: memref<128x128xbf16, #tpu.memory_space<vmem>>, %arg7: memref<1x128xf32, #tpu.memory_space<vmem>>, %arg8: memref<32x128xf32, #tpu.memory_space<vmem>>) attributes {dimension_semantics = [#tpu.dimension_semantics<parallel>], iteration_bounds = array<i64: 2>, scalar_prefetch = 0 : i64, scratch_operands = 0 : i64, tpu.core_type = #tpu.core_type<tc>, window_params = [{transform_indices = @transform_0, window_bounds = array<i64: 32, 128>}, {pipeline_mode = #tpu.pipeline_mode<synchronous>, transform_indices = @transform_1, window_bounds = array<i64: 128, 128>}, {pipeline_mode = #tpu.pipeline_mode<synchronous>, transform_indices = @transform_2, window_bounds = array<i64: 128, 128>}, {pipeline_mode = #tpu.pipeline_mode<synchronous>, transform_indices = @transform_3, window_bounds = array<i64: 1, 128>}, {pipeline_mode = #tpu.pipeline_mode<synchronous>, transform_indices = @transform_4, window_bounds = array<i64: 1, 128>}, {pipeline_mode = #tpu.pipeline_mode<synchronous>, transform_indices = @transform_5, window_bounds = array<i64: 128, 128>}, {pipeline_mode = #tpu.pipeline_mode<synchronous>, transform_indices = @transform_6, window_bounds = array<i64: 1, 128>}, {transform_indices = @transform_7, window_bounds = array<i64: 32, 128>}]} {
    %c0 = arith.constant 0 : index
    %c0_0 = arith.constant 0 : index
    %0 = vector.load %arg1[%c0, %c0_0] : memref<32x128xbf16, #tpu.memory_space<vmem>>, vector<32x128xbf16>
    %c0_1 = arith.constant 0 : index
    %c0_2 = arith.constant 0 : index
    %1 = vector.load %arg2[%c0_1, %c0_2] : memref<128x128xbf16, #tpu.memory_space<vmem>>, vector<128x128xbf16>
    %cst = arith.constant dense<0.000000e+00> : vector<32x128xf32>
    %2 = tpu.matmul %0, %1, %cst {dimension_numbers = #tpu.dot_dimension_numbers<[1], [0], [0], [1], [0, 0, 1, 1], [], []>} : vector<32x128xbf16>, vector<128x128xbf16>, vector<32x128xf32> -> vector<32x128xf32>
    %3 = tpu.iota {dimensions = array<i32: 1>} : vector<32x128xi32>
    %c108_i32 = arith.constant 108 : i32
    %4 = vector.broadcast %c108_i32 : i32 to vector<32x128xi32>
    %5 = arith.cmpi slt, %3, %4 : vector<32x128xi32>
    %6 = arith.mulf %2, %2 : vector<32x128xf32>
    %c0_3 = arith.constant 0 : index
    %c0_4 = arith.constant 0 : index
    %7 = vector.load %arg3[%c0_3, %c0_4] : memref<128x128xf32, #tpu.memory_space<vmem>>, vector<128x128xf32>
    %cst_5 = arith.constant dense<0.000000e+00> : vector<32x128xf32>
    %8 = tpu.matmul %6, %7, %cst_5 {dimension_numbers = #tpu.dot_dimension_numbers<[1], [0], [0], [1], [0, 0, 1, 1], [], []>} : vector<32x128xf32>, vector<128x128xf32>, vector<32x128xf32> -> vector<32x128xf32>
    %cst_6 = arith.constant 0.027777778 : f32
    %9 = vector.broadcast %cst_6 : f32 to vector<32x128xf32>
    %10 = arith.mulf %8, %9 : vector<32x128xf32>
    %cst_7 = arith.constant 9.99999974E-6 : f32
    %11 = vector.broadcast %cst_7 : f32 to vector<32x128xf32>
    %12 = arith.addf %10, %11 : vector<32x128xf32>
    %13 = math.rsqrt %12 : vector<32x128xf32>
    %14 = arith.mulf %2, %13 : vector<32x128xf32>
    %c0_8 = arith.constant 0 : index
    %c0_9 = arith.constant 0 : index
    %15 = vector.load %arg4[%c0_8, %c0_9] : memref<1x128xf32, #tpu.memory_space<vmem>>, vector<1x128xf32>
    %16 = vector.broadcast %15 : vector<1x128xf32> to vector<32x128xf32>
    %17 = arith.mulf %14, %16 : vector<32x128xf32>
    %c0_10 = arith.constant 0 : index
    %c0_11 = arith.constant 0 : index
    %18 = vector.load %arg5[%c0_10, %c0_11] : memref<1x128xf32, #tpu.memory_space<vmem>>, vector<1x128xf32>
    %19 = vector.broadcast %18 : vector<1x128xf32> to vector<32x128xf32>
    %20 = arith.addf %17, %19 : vector<32x128xf32>
    %cst_12 = arith.constant 0.000000e+00 : f32
    %21 = vector.broadcast %cst_12 : f32 to vector<32x128xf32>
    %c0_i32 = arith.constant 0 : i32
    %22 = vector.broadcast %c0_i32 : i32 to vector<32x128xi32>
    %23 = arith.cmpi sge, %3, %22 : vector<32x128xi32>
    %c36_i32 = arith.constant 36 : i32
    %24 = vector.broadcast %c36_i32 : i32 to vector<32x128xi32>
    %25 = arith.cmpi slt, %3, %24 : vector<32x128xi32>
    %26 = arith.andi %23, %25 : vector<32x128xi1>
    %cst_13 = arith.constant 0xFF800000 : f32
    %27 = vector.broadcast %cst_13 : f32 to vector<32x128xf32>
    %28 = arith.select %26, %20, %27 : vector<32x128xi1>, vector<32x128xf32>
    %cst_14 = arith.constant dense<0xFF800000> : vector<32xf32>
    %29 = vector.multi_reduction <maximumf>, %28, %cst_14 [1] : vector<32x128xf32> to vector<32xf32>
    %30 = vector.shape_cast %29 : vector<32xf32> to vector<32x1xf32>
    %31 = vector.shape_cast %30 : vector<32x1xf32> to vector<32x1xf32>
    %32 = vector.broadcast %31 : vector<32x1xf32> to vector<32x128xf32>
    %33 = arith.select %26, %32, %21 : vector<32x128xi1>, vector<32x128xf32>
    %c36_i32_15 = arith.constant 36 : i32
    %34 = vector.broadcast %c36_i32_15 : i32 to vector<32x128xi32>
    %35 = arith.cmpi sge, %3, %34 : vector<32x128xi32>
    %c72_i32 = arith.constant 72 : i32
    %36 = vector.broadcast %c72_i32 : i32 to vector<32x128xi32>
    %37 = arith.cmpi slt, %3, %36 : vector<32x128xi32>
    %38 = arith.andi %35, %37 : vector<32x128xi1>
    %cst_16 = arith.constant 0xFF800000 : f32
    %39 = vector.broadcast %cst_16 : f32 to vector<32x128xf32>
    %40 = arith.select %38, %20, %39 : vector<32x128xi1>, vector<32x128xf32>
    %cst_17 = arith.constant dense<0xFF800000> : vector<32xf32>
    %41 = vector.multi_reduction <maximumf>, %40, %cst_17 [1] : vector<32x128xf32> to vector<32xf32>
    %42 = vector.shape_cast %41 : vector<32xf32> to vector<32x1xf32>
    %43 = vector.shape_cast %42 : vector<32x1xf32> to vector<32x1xf32>
    %44 = vector.broadcast %43 : vector<32x1xf32> to vector<32x128xf32>
    %45 = arith.select %38, %44, %33 : vector<32x128xi1>, vector<32x128xf32>
    %c72_i32_18 = arith.constant 72 : i32
    %46 = vector.broadcast %c72_i32_18 : i32 to vector<32x128xi32>
    %47 = arith.cmpi sge, %3, %46 : vector<32x128xi32>
    %c108_i32_19 = arith.constant 108 : i32
    %48 = vector.broadcast %c108_i32_19 : i32 to vector<32x128xi32>
    %49 = arith.cmpi slt, %3, %48 : vector<32x128xi32>
    %50 = arith.andi %47, %49 : vector<32x128xi1>
    %cst_20 = arith.constant 0xFF800000 : f32
    %51 = vector.broadcast %cst_20 : f32 to vector<32x128xf32>
    %52 = arith.select %50, %20, %51 : vector<32x128xi1>, vector<32x128xf32>
    %cst_21 = arith.constant dense<0xFF800000> : vector<32xf32>
    %53 = vector.multi_reduction <maximumf>, %52, %cst_21 [1] : vector<32x128xf32> to vector<32xf32>
    %54 = vector.shape_cast %53 : vector<32xf32> to vector<32x1xf32>
    %55 = vector.shape_cast %54 : vector<32x1xf32> to vector<32x1xf32>
    %56 = vector.broadcast %55 : vector<32x1xf32> to vector<32x128xf32>
    %57 = arith.select %50, %56, %45 : vector<32x128xi1>, vector<32x128xf32>
    %58 = arith.subf %20, %57 : vector<32x128xf32>
    %59 = math.exp %58 : vector<32x128xf32>
    %cst_22 = arith.constant 0.000000e+00 : f32
    %60 = vector.broadcast %cst_22 : f32 to vector<32x128xf32>
    %61 = arith.select %5, %59, %60 : vector<32x128xi1>, vector<32x128xf32>
    %c0_23 = arith.constant 0 : index
    %c0_24 = arith.constant 0 : index
    %62 = vector.load %arg3[%c0_23, %c0_24] : memref<128x128xf32, #tpu.memory_space<vmem>>, vector<128x128xf32>
    %cst_25 = arith.constant dense<0.000000e+00> : vector<32x128xf32>
    %63 = tpu.matmul %61, %62, %cst_25 {dimension_numbers = #tpu.dot_dimension_numbers<[1], [0], [0], [1], [0, 0, 1, 1], [], []>} : vector<32x128xf32>, vector<128x128xf32>, vector<32x128xf32> -> vector<32x128xf32>
    %cst_26 = arith.constant 2.500000e-01 : f32
    %64 = vector.broadcast %cst_26 : f32 to vector<32x128xf32>
    %65 = arith.mulf %63, %64 : vector<32x128xf32>
    %cst_27 = arith.constant 1.000000e+00 : f32
    %66 = vector.broadcast %cst_27 : f32 to vector<32x128xf32>
    %67 = arith.select %5, %65, %66 : vector<32x128xi1>, vector<32x128xf32>
    %68 = tpu.reciprocal %67 {approx = true} : vector<32x128xf32> -> vector<32x128xf32>
    %69 = arith.mulf %61, %68 : vector<32x128xf32>
    %70 = arith.extf %0 : vector<32x128xbf16> to vector<32x128xf32>
    %71 = arith.mulf %69, %70 : vector<32x128xf32>
    %72 = arith.truncf %71 : vector<32x128xf32> to vector<32x128xbf16>
    %c0_28 = arith.constant 0 : index
    %c0_29 = arith.constant 0 : index
    %73 = vector.load %arg6[%c0_28, %c0_29] : memref<128x128xbf16, #tpu.memory_space<vmem>>, vector<128x128xbf16>
    %cst_30 = arith.constant dense<0.000000e+00> : vector<32x128xf32>
    %74 = tpu.matmul %72, %73, %cst_30 {dimension_numbers = #tpu.dot_dimension_numbers<[1], [0], [0], [1], [0, 0, 1, 1], [], []>} : vector<32x128xbf16>, vector<128x128xbf16>, vector<32x128xf32> -> vector<32x128xf32>
    %c0_31 = arith.constant 0 : index
    %c0_32 = arith.constant 0 : index
    %75 = vector.load %arg7[%c0_31, %c0_32] : memref<1x128xf32, #tpu.memory_space<vmem>>, vector<1x128xf32>
    %76 = vector.broadcast %75 : vector<1x128xf32> to vector<32x128xf32>
    %77 = arith.addf %74, %76 : vector<32x128xf32>
    %c0_33 = arith.constant 0 : index
    %c0_34 = arith.constant 0 : index
    %78 = vector.load %arg8[%c0_33, %c0_34] : memref<32x128xf32, #tpu.memory_space<vmem>>, vector<32x128xf32>
    tpu.vector_store %arg8[%c0_33, %c0_34], %77 {strides = array<i32>} : memref<32x128xf32, #tpu.memory_space<vmem>>, vector<32x128xf32>,
    return
  }
  func.func @transform_0(%arg0: i32) -> (i32, i32) {
    %c0_i32 = arith.constant 0 : i32
    %c0_i32_0 = arith.constant 0 : i32
    return %arg0, %c0_i32 : i32, i32
  }
  func.func @transform_1(%arg0: i32) -> (i32, i32) {
    %c0_i32 = arith.constant 0 : i32
    %c0_i32_0 = arith.constant 0 : i32
    %c0_i32_1 = arith.constant 0 : i32
    return %c0_i32, %c0_i32_0 : i32, i32
  }
  func.func @transform_2(%arg0: i32) -> (i32, i32) {
    %c0_i32 = arith.constant 0 : i32
    %c0_i32_0 = arith.constant 0 : i32
    %c0_i32_1 = arith.constant 0 : i32
    return %c0_i32, %c0_i32_0 : i32, i32
  }
  func.func @transform_3(%arg0: i32) -> (i32, i32) {
    %c0_i32 = arith.constant 0 : i32
    %c0_i32_0 = arith.constant 0 : i32
    %c0_i32_1 = arith.constant 0 : i32
    return %c0_i32, %c0_i32_0 : i32, i32
  }
  func.func @transform_4(%arg0: i32) -> (i32, i32) {
    %c0_i32 = arith.constant 0 : i32
    %c0_i32_0 = arith.constant 0 : i32
    %c0_i32_1 = arith.constant 0 : i32
    return %c0_i32, %c0_i32_0 : i32, i32
  }
  func.func @transform_5(%arg0: i32) -> (i32, i32) {
    %c0_i32 = arith.constant 0 : i32
    %c0_i32_0 = arith.constant 0 : i32
    %c0_i32_1 = arith.constant 0 : i32
    return %c0_i32, %c0_i32_0 : i32, i32
  }
  func.func @transform_6(%arg0: i32) -> (i32, i32) {
    %c0_i32 = arith.constant 0 : i32
    %c0_i32_0 = arith.constant 0 : i32
    %c0_i32_1 = arith.constant 0 : i32
    return %c0_i32, %c0_i32_0 : i32, i32
  }
  func.func @transform_7(%arg0: i32) -> (i32, i32) {
    %c0_i32 = arith.constant 0 : i32
    %c0_i32_0 = arith.constant 0 : i32
    return %arg0, %c0_i32 : i32, i32
  }
}

</mosaic_0001>

<bundles_post_ra>
// kernel: tpu_custom_call.1
= control target key start
LH: loop header
LB: loop body
LE: loop exit
PB: predicated region body
PF: predicated region fallthrough
CT: control target
= control target key end

     0   :  { %s1682_s0 = inlined_call_operand.hbm [shape: bf16[64,128], index: 0, kind: input, shape index: {}]   ;;  %s1683_s1 = inlined_call_operand.hbm [shape: bf16[128,128], index: 1, kind: input, shape index: {}]   ;;  %s1684_s2 = inlined_call_operand.hbm [shape: f32[128,128], index: 2, kind: input, shape index: {}]   ;;  %s1685_s3 = inlined_call_operand.vmem [shape: f32[1,128], index: 3, kind: input, shape index: {}]   ;;  %s1686_s4 = inlined_call_operand.vmem [shape: f32[1,128], index: 4, kind: input, shape index: {}]   ;;  %s1687_s5 = inlined_call_operand.hbm [shape: bf16[128,128], index: 5, kind: input, shape index: {}]   ;;  %s1688_s6 = inlined_call_operand.vmem [shape: f32[1,128], index: 6, kind: input, shape index: {}]   ;;  %s1689_s7 = inlined_call_operand.hbm [shape: f32[64,128], index: 7, kind: output, shape index: {}]  }
   0x1   :  { %1692 = sst [smem:[#allocation15_spill]] %s1683_s1 }
   0x2   :  { %12 = vsyncpa [#allocation3], 0 }
   0x3   :  { %14 = vsyncpa [#allocation3 + $0x1], 0 }
   0x4   :  { %15 = vsyncpa [#allocation6], 0 }
   0x5   :  { %16 = vsyncpa [#allocation9], 0 }
   0x6   :  { %17 = vsyncpa [#allocation4], 0 }
   0x7   :  { %19 = vsyncpa [#allocation4 + $0x1], 0  ;;  %s1377_s24 = smov 0   ;;  %s1379_s25 = smov 0  }
   0x8   :  { %s1381_s26 = smov 0   ;;  %s1383_s27 = smov 0  }
   0x9 LB: > { %s1398_s28 = sadd.s32 4294967295, %s1326_s27   ;;  %s906_s29 = sadd.s32 4294967294, %s1326_s27   ;;  %s1326_s27 = sphi %s1383_s27, %s1710_s27   ;;  %s1322_s26 = sphi %s1381_s26, %s1709_s26   ;;  %s1318_s25 = sphi %s1379_s25, %s1708_s25   ;;  %s1314_s24 = sphi %s1377_s24, %s1707_s24  }
   0xa   : > { %p45_p0 = scmp.ne.s32.totalorder %s1318_s25, %s1314_s24  ;;  %p46_p1 = scmp.eq.s32.totalorder %s1398_s28, 0 }
   0xb   : > { %p195_p2 = scmp.eq.s32.totalorder %s1398_s28, 1  ;;  %p201_p3 = scmp.eq.s32.totalorder %s906_s29, 1 }
   0xc   : > { %p1407_p4 = por %p46_p1, %p45_p0  ;;  %p907_p5 = scmp.ge.s32.totalorder %s1326_s27, 1 }
   0xd   : > { %p1412_p6 = por %p201_p3, %p45_p0  ;;  %p208_p7 = scmp.lt.s32.totalorder %s1326_s27, 3 }
   0xe   : > { %s1695_s1 = sld [smem:[#allocation15_spill]]  ;;  %s1328_s13 = smov [#allocation5]  }
   0xf   : > { %p1420_p8 = pnand %p907_p5, %p208_p7  ;;  %s221_s14 = sshll.u32 %s1328_s13, 4  ;;  %s222_s14 = int_to_ptr.vmem [resolvable:$true] %s221_s14 }
  0x10   : > { %s233_s18 = sshll.u32 %s1684_s2, 4  ;;  %s1690_s19 = smov 64   ;;  %s234_s18 = int_to_ptr.hbm [resolvable:$true] %s233_s18 }
  0x11   : > { %p1038_p9 = pneg %p1420_p8  ;;  %s1691_s20 = smov 4  }
  0x12   : > { %s1331_s21 = smov [#allocation7]   ;;  %s1332_s23 = smov 128  }
  0x13   : > { %p1428_p10 = pnand %p1038_p9, %p46_p1  ;;  %s235_s22 = sshll.u32 %s1331_s21, 4  ;;  %s236_s22 = int_to_ptr.vmem [resolvable:$true] %s235_s22 }
  0x14   : > { %s219_s11 = sshll.u32 %s1695_s1, 4  ;;  %s1333_s29 = smov 8   ;;  %s220_s11 = int_to_ptr.hbm [resolvable:$true] %s219_s11 }
  0x15   : > { %1041 = dma.hbm_to_vmem [thread:$0]  (!%p1428_p10), %s220_s11, 1024, %s222_s14, [#allocation6], %s1690_s19, %s1690_s19, %s1691_s20  }
  0x16   : > { %1044 = dma.hbm_to_vmem [thread:$0]  (!%p1428_p10), %s234_s18, 2048, %s236_s22, [#allocation6], %s1332_s23, %s1332_s23, %s1333_s29  }
  0x17   : > { %s253_s13 = sshll.u32 %s1687_s5, 4  ;;  %s1334_s11 = smov [#allocation8]   ;;  %s254_s13 = int_to_ptr.hbm [resolvable:$true] %s253_s13 }
  0x18   : > { %s255_s14 = sshll.u32 %s1334_s11, 4  ;;  %s1452_s16 = sadd.s32 1, %s1326_s27   ;;  %s256_s14 = int_to_ptr.vmem [resolvable:$true] %s255_s14 }
  0x19   : > { %1047 = dma.hbm_to_vmem [thread:$0]  (!%p1428_p10), %s254_s13, 1024, %s256_s14, [#allocation9], %s1690_s19, %s1690_s19, %s1691_s20  }
  0x1a   : > { %s29_s17 = ssub.s32 %s1326_s27, %s1452_s16  ;;  %s32_s18 = sadd.s32 1, %s1322_s26 }
  0x1b   : > { %p30_p12 = scmp.eq.s32.totalorder %s29_s17, 0  ;;  %p39_p13 = scmp.ne.s32.totalorder %s1322_s26, %s1318_s25 }
  0x1c   : > { %p40_p0 = scmp.eq.s32.totalorder %s1326_s27, 0  ;;  %p1059_p5 = scmp.lt.s32.totalorder %s1326_s27, 2 }
  0x1d   : > { %s1461_s21 = scalar_select %p30_p12, %s1322_s26, %s32_s18  }
  0x1e   : > { %p1465_p3 = por %p195_p2, %p39_p13  ;;  %s272_s15 = sand.u32 1, %s1322_s26  }
  0x1f   : > { %s1002_s23 = sshll.u32 %s1326_s27, 4  ;;  %p41_p7 = por %p40_p0, %p39_p13 }
  0x20   : > { %s912_s29 = sshll.u32 %s272_s15, 4  ;;  %s281_s13 = scalar_lea.hbm %s1682_s0, %s1002_s23 }
  0x21   : > { %s282_s11 = sshll.u32 %s281_s13, 4  ;;  %s276_s14 = scalar_lea.vmem [#allocation2], %s912_s29  ;;  %s283_s11 = int_to_ptr.hbm [resolvable:$true] %s282_s11 }
  0x22   : > { %s284_s17 = sshll.u32 %s276_s14, 4  ;;  %p1475_p9 = pnand %p1059_p5, %p41_p7  ;;  %s285_s17 = int_to_ptr.vmem [resolvable:$true] %s284_s17 }
  0x23   : > { %s273_s19 = scalar_lea.sflag [#allocation3], %s272_s15  ;;  %s1222_s20 = sshra.s32 %s283_s11, 4  ;;  %s1223_s20 = int_to_ptr.hbm [resolvable:$true] %s1222_s20 }
  0x24   : > { %s1224_s1 = scalar_lea.hbm %s1223_s20, 16  ;;  %p1226_p10 = pneg %p1475_p9 }
  0x25   : > { %p1225_p2 = scmp.ne.s32.totalorder %s1223_s20, %s1224_s1  ;;  %s1229_s29 = scalar_lea.hbm %s1682_s0, 32 }
  0x26   : > { %p1230_p0 = scmp.lt.s32.totalorder %s1223_s20, %s1682_s0  ;;  %p1231_p5 = scmp.lt.s32.totalorder %s1229_s29, %s1224_s1 }
  0x27   : > { %p1227_p12 = pnand %p1226_p10, %p1225_p2 }
  0x28   : > { %p1232_p7 = por %p1231_p5, %p1230_p0 }
  0x29   : > { %p1228_p13 = pneg %p1227_p12 }
  0x2b   : > { %p1233_p11 = pnand %p1232_p7, %p1228_p13 }
  0x2d   : > { %1236 = shalt.err (!%p1233_p11)
}
  0x2e   : > { %s1700_s15 = smov 4   ;;  %s1701_s14 = smov 64  }
  0x2f   : > { %1051 = dma.hbm_to_vmem [thread:$0]  (!%p1475_p9), %s283_s11, 256, %s285_s17, %s273_s19, %s1701_s14, %s1701_s14, %s1700_s15  }
  0x30   : > { %296 = sbr.rel (%p1420_p8) target bundleno = 828 (0x33c), region = 48  ;;  %s1495_s23 = sand.u32 (!%p1420_p8), 1, %s1318_s25  }
  0x31   : > { %s916_s20 = sshll.u32 (!%p1420_p8), %s1495_s23, 4  ;;  %s299_s1 = scalar_lea.sflag (!%p1420_p8), [#allocation3], %s1495_s23 }
  0x32   : > { %s1499_s9 = scalar_lea.vmem (!%p1420_p8), [#allocation2], %s916_s20 }
  0x35   : > { %1297 = dma.done.wait (%p1407_p4), %s299_s1, 256  }
  0x36   : > { %1299 = vsyncadd (%p1407_p4), %s299_s1, 4294967040 }
  0x37   : > { %1301 = dma.done.wait (%p46_p1), [#allocation6], 3072  }
  0x38   : > { %1303 = vsyncadd (%p46_p1), [#allocation6], 4294964224 }
  0x39   : > { %1305 = dma.done.wait (%p46_p1), [#allocation9], 1024  }
  0x3a   : > { %1307 = vsyncadd (%p46_p1), [#allocation9], 4294966272  ;;  %v1012_v0 = vld [vmem:[#allocation5 + $0x38] sm:$0xff]  ;;  %v1011_v1 = vld [vmem:[#allocation5 + $0x30] sm:$0xff]  ;;  %v450_v43 = vlaneseq  ;;  %s920_s17 = sshll.u32 %s1495_s23, 5  ;;  %s1021_s13 = sshll.u32 %s1398_s28, 5 }
  0x3b   : > { %431 = vmatpush.bf16.msra.mxu0 %v1012_v0  ;;  %v1010_v2 = vld [vmem:[#allocation5 + $0x28] sm:$0xff]  ;;  %v1009_v3 = vld [vmem:[#allocation5 + $0x20] sm:$0xff]  ;;  %v1008_v4 = vld [vmem:[#allocation5 + $0x18] sm:$0xff]  ;;  %s348_s10 = scalar_lea.vmem [#allocation10], %s920_s17  ;;  %s800_s20 = scalar_lea.hbm %s1689_s7, %s1021_s13 }
  0x3c   : > { %v472_v5 = vld [vmem:[#allocation7 + $0x78] sm:$0xff]  ;;  %v471_v6 = vld [vmem:[#allocation7 + $0x70] sm:$0xff]  ;;  %v470_v8 = vld [vmem:[#allocation7 + $0x68] sm:$0xff]  ;;  %v1527_v50 = vand.u32 127, %v450_v43  ;;  %s801_s1 = sshll.u32 %s348_s10, 4  ;;  %s789_s30 = scalar_lea.sflag [#allocation4], %s1495_s23  ;;  %s802_s1 = int_to_ptr.vmem [resolvable:$true] %s801_s1 }
  0x3d   : > { %v1007_v7 = vld [vmem:[#allocation5 + $0x10] sm:$0xff]  ;;  %473 = vmatpush.msra.mxu1 %v472_v5  ;;  %642 = vmatpush.msra.mxu2 %v472_v5  ;;  %v469_v9 = vld [vmem:[#allocation7 + $0x60] sm:$0xff]  ;;  %v1006_v10 = vld [vmem:[#allocation5 + $0x8] sm:$0xff]  ;;  %s1272_s17 = scalar_lea.hbm %s1689_s7, 64 }
  0x3e   : > { %v468_v11 = vld [vmem:[#allocation7 + $0x58] sm:$0xff]  ;;  %v467_v12 = vld [vmem:[#allocation7 + $0x50] sm:$0xff]  ;;  %v1005_v13 = vld [vmem:[#allocation5] sm:$0xff]  ;;  %vm452_vm3 = vcmp.lt.s32.totalorder %v1527_v50, 108  ;;  %vm608_vm4 = vcmp.ge.s32.totalorder %v1527_v50, 72  ;;  %vm571_vm7 = vcmp.lt.s32.totalorder %v1527_v50, 36 }
  0x3f   : > { %432 = vmatpush.bf16.msra.mxu0 %v1011_v1  ;;  %474 = vmatpush.msra.mxu1 %v471_v6  ;;  %v466_v14 = vld [vmem:[#allocation7 + $0x48] sm:$0xff]  ;;  %v1003_v15 = vld [vmem:[%s1499_s9] sm:$0xff]  ;;  %v464_v17 = vld [vmem:[#allocation7 + $0x38] sm:$0xff]  ;;  %vm589_vm10 = vcmp.ge.s32.totalorder %v1527_v50, 36  ;;  %vm590_vm11 = vcmp.lt.s32.totalorder %v1527_v50, 72 }
  0x40   : > { %643 = vmatpush.msra.mxu2 %v471_v6  ;;  %v465_v16 = vld [vmem:[#allocation7 + $0x40] sm:$0xff]  ;;  %v463_v18 = vld [vmem:[#allocation7 + $0x30] sm:$0xff]  ;;  %v462_v19 = vld [vmem:[#allocation7 + $0x28] sm:$0xff] }
  0x41   : > { %475 = vmatpush.msra.mxu1 %v470_v8  ;;  %v461_v20 = vld [vmem:[#allocation7 + $0x20] sm:$0xff]  ;;  %v460_v21 = vld [vmem:[#allocation7 + $0x18] sm:$0xff]  ;;  %v459_v22 = vld [vmem:[#allocation7 + $0x10] sm:$0xff] }
  0x42   : > { %644 = vmatpush.msra.mxu2 %v470_v8  ;;  %v1004_v23 = vld [vmem:[%s1499_s9 + $0x8] sm:$0xff]  ;;  %v457_v25 = vld [vmem:[#allocation7] sm:$0xff]  ;;  %vm1544_vm6 = vmand %vm608_vm4, %vm452_vm3 }
  0x43   : > { %433 = vmatpush.bf16.msra.mxu0 %v1010_v2  ;;  %476 = vmatpush.msra.mxu1 %v469_v9  ;;  %v458_v24 = vld [vmem:[#allocation7 + $0x8] sm:$0xff]  ;;  %v1532_v53 = vld [vmem:[%s1685_s3] ss:$0 sm:$0xff]  ;;  %vm1562_vm14 = vmand %vm589_vm10, %vm590_vm11 }
  0x44   : > { %645 = vmatpush.msra.mxu2 %v469_v9  ;;  %v1538_v57 = vld [vmem:[%s1686_s4] ss:$0 sm:$0xff]  ;;  %v1015_v63 = vld [vmem:[#allocation8 + $0x10] sm:$0xff] }
  0x45   : > { %477 = vmatpush.msra.mxu1 %v468_v11 }
  0x46   : > { %646 = vmatpush.msra.mxu2 %v468_v11 }
  0x47   : > { %434 = vmatpush.bf16.msra.mxu0 %v1009_v3  ;;  %478 = vmatpush.msra.mxu1 %v467_v12 }
  0x48   : > { %647 = vmatpush.msra.mxu2 %v467_v12 }
  0x49   : > { %479 = vmatpush.msra.mxu1 %v466_v14 }
  0x4a   : > { %648 = vmatpush.msra.mxu2 %v466_v14 }
  0x4b   : > { %435 = vmatpush.bf16.msra.mxu0 %v1008_v4  ;;  %480 = vmatpush.msra.mxu1 %v465_v16 }
  0x4c   : > { %649 = vmatpush.msra.mxu2 %v465_v16 }
  0x4d   : > { %481 = vmatpush.msra.mxu1 %v464_v17 }
  0x4e   : > { %650 = vmatpush.msra.mxu2 %v464_v17 }
  0x4f   : > { %436 = vmatpush.bf16.msra.mxu0 %v1007_v7  ;;  %482 = vmatpush.msra.mxu1 %v463_v18 }
  0x50   : > { %651 = vmatpush.msra.mxu2 %v463_v18 }
  0x51   : > { %483 = vmatpush.msra.mxu1 %v462_v19 }
  0x52   : > { %652 = vmatpush.msra.mxu2 %v462_v19 }
  0x53   : > { %437 = vmatpush.bf16.msra.mxu0 %v1006_v10  ;;  %484 = vmatpush.msra.mxu1 %v461_v20 }
  0x54   : > { %653 = vmatpush.msra.mxu2 %v461_v20 }
  0x55   : > { %485 = vmatpush.msra.mxu1 %v460_v21 }
  0x56   : > { %654 = vmatpush.msra.mxu2 %v460_v21 }
  0x57   : > { %438 = vmatpush.bf16.msra.mxu0 %v1005_v13  ;;  %486 = vmatpush.msra.mxu1 %v459_v22  ;;  %v1016_v13 = vld [vmem:[#allocation8 + $0x18] sm:$0xff] }
  0x58   : > { %655 = vmatpush.msra.mxu2 %v459_v22 }
  0x59   : > { %487 = vmatpush.msra.mxu1 %v458_v24 }
  0x5a   : > { %439 = vmatmul.bf16.vlgmr.msra.gmra.mxu0 %v1003_v15  ;;  %656 = vmatpush.msra.mxu2 %v458_v24 }
  0x5b   : > { %488 = vmatpush.msra.mxu1 %v457_v25 }
  0x5c   : > { %657 = vmatpush.msra.mxu2 %v457_v25 }
  0x6a   : > { %444 = vmatmul.bf16.gmra.mxu0 %v1004_v23 }
  0xd7   : > { %v440_v26 = vpop.f32.mrf.mxu0 }
  0xd8   : > { %v453_v27 = vmul.f32 %v440_v26, %v440_v26 }
  0xda   : > { %489 = vmatmul.f32.vlgmr.msra.gmra.mxu1 %v453_v27 }
  0xdf   : > { %v1515_v28 = vpop.f32.mrf.mxu0 }
  0xe0   : > { %v454_v29 = vmul.f32 %v1515_v28, %v1515_v28 }
  0xe2   : > { %492 = vmatmul.f32.gmra.mxu1 %v454_v29 }
  0xe7   : > { %v1519_v30 = vpop.f32.mrf.mxu0 }
  0xe8   : > { %v455_v31 = vmul.f32 %v1519_v30, %v1519_v30 }
  0xea   : > { %495 = vmatmul.f32.gmra.mxu1 %v455_v31 }
  0xef   : > { %v1523_v32 = vpop.f32.mrf.mxu0 }
  0xf0   : > { %v456_v33 = vmul.f32 %v1523_v32, %v1523_v32 }
  0xf2   : > { %498 = vmatmul.f32.gmra.mxu1 %v456_v33 }
 0x157   : > { %v490_v34 = vpop.f32.mrf.mxu1 }
 0x158   : > { %v502_v35 = vmul.f32 0.027777778, %v490_v34 }
 0x15a   : > { %v506_v36 = vadd.f32 1e-05, %v502_v35 }
 0x15c   : > { %1108 = vrsqrt.f32 %v506_v36  ;;  %vm516_vm1 = vweird.f32 %v506_v36 }
 0x15f   : > { %v493_v37 = vpop.f32.mrf.mxu1 }
 0x160   : > { %v503_v38 = vmul.f32 0.027777778, %v493_v37 }
 0x162   : > { %v1109_v39 = vpop.eup %1108  ;;  %v507_v40 = vadd.f32 1e-05, %v503_v38 }
 0x163   : > { %v511_v41 = vmul.f32 %v1109_v39, %v506_v36  ;;  %vm517_vm0 = vweird.f32 %v1109_v39 }
 0x164   : > { %1110 = vrsqrt.f32 %v507_v40  ;;  %vm518_vm2 = vmor %vm516_vm1, %vm517_vm0  ;;  %vm526_vm8 = vweird.f32 %v507_v40 }
 0x165   : > { %v512_v42 = vmul.f32 %v1109_v39, %v511_v41 }
 0x167   : > { %v513_v44 = vmul.f32 0.5, %v512_v42  ;;  %v496_v45 = vpop.f32.mrf.mxu1 }
 0x168   : > { %v504_v46 = vmul.f32 0.027777778, %v496_v45 }
 0x169   : > { %v514_v47 = vsub.f32 1.5, %v513_v44 }
 0x16a   : > { %v1111_v48 = vpop.eup %1110  ;;  %v508_v49 = vadd.f32 1e-05, %v504_v46 }
 0x16b   : > { %v515_v51 = vmul.f32 %v1109_v39, %v514_v47  ;;  %v521_v52 = vmul.f32 %v1111_v48, %v507_v40  ;;  %vm527_vm5 = vweird.f32 %v1111_v48 }
 0x16c   : > { %1112 = vrsqrt.f32 %v508_v49  ;;  %vm528_vm9 = vmor %vm526_vm8, %vm527_vm5  ;;  %vm536_vm12 = vweird.f32 %v508_v49 }
 0x16d   : > { %v519_v54 = vsel %vm518_vm2, %v1109_v39, %v515_v51  ;;  %v522_v55 = vmul.f32 %v1111_v48, %v521_v52  ;;  %v1020_v52 = vld [vmem:[#allocation8 + $0x38] sm:$0xff] }
 0x16e   : > { %v550_v56 = vmul.f32 %v519_v54, %v440_v26  ;;  %765 = vmatpush.bf16.msra.mxu3 %v1020_v52 }
 0x16f   : > { %v523_v58 = vmul.f32 0.5, %v522_v55  ;;  %v499_v59 = vpop.f32.mrf.mxu1 }
 0x170   : > { %v505_v60 = vmul.f32 0.027777778, %v499_v59  ;;  %v558_v61 = vmul.f32 %v1532_v53, %v550_v56  ;;  %v1019_v56 = vld [vmem:[#allocation8 + $0x30] sm:$0xff] }
 0x171   : > { %v524_v62 = vsub.f32 1.5, %v523_v58 }
 0x172   : > { %v1113_v0 = vpop.eup %1112  ;;  %v509_v1 = vadd.f32 1e-05, %v505_v60  ;;  %v1550_v2 = vadd.f32 %v1538_v57, %v558_v61  ;;  %766 = vmatpush.bf16.msra.mxu3 %v1019_v56 }
 0x173   : > { %v525_v3 = vmul.f32 %v1111_v48, %v524_v62  ;;  %v531_v4 = vmul.f32 %v1113_v0, %v508_v49  ;;  %vm537_vm13 = vweird.f32 %v1113_v0 }
 0x174   : > { %1114 = vrsqrt.f32 %v509_v1  ;;  %v610_v5 = vsel %vm1544_vm6, %v1550_v2, -inf  ;;  %v573_v6 = vsel %vm571_vm7, %v1550_v2, -inf  ;;  %vm538_vm15 = vmor %vm536_vm12, %vm537_vm13  ;;  %v592_v18 = vsel %vm1562_vm14, %v1550_v2, -inf }
 0x175   : > { %v529_v7 = vsel %vm528_vm9, %v1111_v48, %v525_v3  ;;  %v532_v8 = vmul.f32 %v1113_v0, %v531_v4  ;;  %614 = vmax.xlane.f32.xlu1 %v610_v5  ;;  %577 = vmax.xlane.f32.xlu0 %v573_v6  ;;  %vm546_vm1 = vweird.f32 %v509_v1 }
 0x176   : > { %v551_v9 = vmul.f32 %v529_v7, %v1515_v28 }
 0x177   : > { %v533_v10 = vmul.f32 0.5, %v532_v8 }
 0x178   : > { %v559_v11 = vmul.f32 %v1532_v53, %v551_v9 }
 0x179   : > { %v534_v12 = vsub.f32 1.5, %v533_v10 }
 0x17a   : > { %v1115_v14 = vpop.eup %1114  ;;  %v567_v15 = vadd.f32 %v1538_v57, %v559_v11 }
 0x17b   : > { %v535_v16 = vmul.f32 %v1113_v0, %v534_v12  ;;  %v541_v17 = vmul.f32 %v1115_v14, %v509_v1  ;;  %vm547_vm0 = vweird.f32 %v1115_v14 }
 0x17c   : > { %v593_v19 = vsel %vm1562_vm14, %v567_v15, -inf  ;;  %v574_v20 = vsel %vm571_vm7, %v567_v15, -inf  ;;  %vm548_vm2 = vmor %vm546_vm1, %vm547_vm0  ;;  %v611_v29 = vsel %vm1544_vm6, %v567_v15, -inf }
 0x17d   : > { %v539_v21 = vsel %vm538_vm15, %v1113_v0, %v535_v16  ;;  %v542_v22 = vmul.f32 %v1115_v14, %v541_v17  ;;  %596 = vmax.xlane.f32.xlu0 %v592_v18  ;;  %598 = vmax.xlane.f32.xlu2 %v593_v19  ;;  %v1018_v17 = vld [vmem:[#allocation8 + $0x28] sm:$0xff]  ;;  %v1017_v18 = vld [vmem:[#allocation8 + $0x20] sm:$0xff] }
 0x17e   : > { %v552_v23 = vmul.f32 %v539_v21, %v1519_v30  ;;  %579 = vmax.xlane.f32.xlu1 %v574_v20  ;;  %767 = vmatpush.bf16.msra.mxu3 %v1018_v17  ;;  %v1014_v19 = vld [vmem:[#allocation8 + $0x8] sm:$0xff]  ;;  %v1013_v20 = vld [vmem:[#allocation8] sm:$0xff] }
 0x17f   : > { %v543_v24 = vmul.f32 0.5, %v542_v22 }
 0x180   : > { %v560_v25 = vmul.f32 %v1532_v53, %v552_v23 }
 0x181   : > { %v544_v26 = vsub.f32 1.5, %v543_v24 }
 0x182   : > { %v568_v27 = vadd.f32 %v1538_v57, %v560_v25  ;;  %768 = vmatpush.bf16.msra.mxu3 %v1017_v18 }
 0x183   : > { %v545_v28 = vmul.f32 %v1115_v14, %v544_v26 }
 0x184   : > { %v594_v31 = vsel %vm1562_vm14, %v568_v27, -inf  ;;  %v575_v30 = vsel %vm571_vm7, %v568_v27, -inf  ;;  %v612_v37 = vsel %vm1544_vm6, %v568_v27, -inf }
 0x185   : > { %v549_v33 = vsel %vm548_vm2, %v1115_v14, %v545_v28  ;;  %616 = vmax.xlane.f32.xlu2 %v611_v29  ;;  %581 = vmax.xlane.f32.xlu0 %v575_v30  ;;  %v351_v28 = vld [vmem:[%s1499_s9] sm:$0xff]  }
 0x186   : > { %v553_v34 = vmul.f32 %v549_v33, %v1523_v32  ;;  %600 = vmax.xlane.f32.xlu1 %v594_v31  ;;  %769 = vmatpush.bf16.msra.mxu3 %v1016_v13 }
 0x188   : > { %v561_v35 = vmul.f32 %v1532_v53, %v553_v34  ;;  %v687_v34 = vunpack.c.l.bf16 %v351_v28 }
 0x18a   : > { %v569_v36 = vadd.f32 %v1538_v57, %v561_v35  ;;  %770 = vmatpush.bf16.msra.mxu3 %v1015_v63  ;;  %v688_v35 = vunpack.c.h.bf16 %v351_v28 }
 0x18c   : > { %v595_v38 = vsel %vm1562_vm14, %v569_v36, -inf  ;;  %v576_v39 = vsel %vm571_vm7, %v569_v36, -inf  ;;  %v613_v32 = vsel %vm1544_vm6, %v569_v36, -inf }
 0x18d   : > { %618 = vmax.xlane.f32.xlu2 %v612_v37  ;;  %583 = vmax.xlane.f32.xlu0 %v576_v39 }
 0x18e   : > { %602 = vmax.xlane.f32.xlu1 %v595_v38  ;;  %771 = vmatpush.bf16.msra.mxu3 %v1014_v19 }
 0x192   : > { %772 = vmatpush.bf16.msra.mxu3 %v1013_v20 }
 0x195   : > { %620 = vmax.xlane.f32.xlu2 %v613_v32 }
 0x1e8   : > { %v615_v40 = vpop.xlane.xlu1 %614  ;;  %v578_v41 = vpop.xlane.xlu0 %577 }
 0x1e9   : > { %v585_v42 = vsel %vm571_vm7, %v578_v41, 0.0 }
 0x1f0   : > { %v597_v43 = vpop.xlane.xlu0 %596  ;;  %v599_v44 = vpop.xlane.xlu2 %598 }
 0x1f1   : > { %v604_v45 = vsel %vm1562_vm14, %v597_v43, %v585_v42  ;;  %v580_v46 = vpop.xlane.xlu1 %579 }
 0x1f2   : > { %v622_v47 = vsel %vm1544_vm6, %v615_v40, %v604_v45  ;;  %v586_v51 = vsel %vm571_vm7, %v580_v46, 0.0  ;;  %v353_v46 = vld [vmem:[%s1499_s9 + $0x8] sm:$0xff]   ;;  %s803_s9 = sshll.u32 %s800_s20, 4  ;;  %s804_s9 = int_to_ptr.hbm [resolvable:$true] %s803_s9 }
 0x1f3   : > { %v626_v48 = vsub.f32 %v1550_v2, %v622_v47  ;;  %v605_v53 = vsel %vm1562_vm14, %v599_v44, %v586_v51  ;;  %v690_v51 = vunpack.c.h.bf16 %v353_v46  ;;  %s1266_s12 = sshra.s32 %s804_s9, 4  ;;  %s1267_s12 = int_to_ptr.hbm [resolvable:$true] %s1266_s12 }
 0x1f4   : > { %s1268_s19 = scalar_lea.hbm %s1267_s12, 32  ;;  %p1273_p11 = scmp.lt.s32.totalorder %s1267_s12, %s1689_s7 }
 0x1f5   : > { %v630_v49 = vmul.f32 1.442695, %v626_v48  ;;  %p1269_p1 = scmp.ne.s32.totalorder %s1267_s12, %s1268_s19  ;;  %p1274_p9 = scmp.lt.s32.totalorder %s1272_s17, %s1268_s19 }
 0x1f7   : > { %1116 = vpow2.f32 %v630_v49  ;;  %v689_v49 = vunpack.c.l.bf16 %v353_v46  ;;  %p1270_p4 = pnand %p1269_p1, %p1465_p3  ;;  %p1275_p2 = por %p1274_p9, %p1273_p11 }
 0x1f8   : > { %v617_v54 = vpop.xlane.xlu2 %616  ;;  %v582_v55 = vpop.xlane.xlu0 %581 }
 0x1f9   : > { %v623_v57 = vsel %vm1544_vm6, %v617_v54, %v605_v53  ;;  %v601_v59 = vpop.xlane.xlu1 %600  ;;  %v587_v62 = vsel %vm571_vm7, %v582_v55, 0.0  ;;  %p1271_p8 = pneg %p1270_p4 }
 0x1fa   : > { %v627_v58 = vsub.f32 %v567_v15, %v623_v57  ;;  %v606_v0 = vsel %vm1562_vm14, %v601_v59, %v587_v62 }
 0x1fb   : > { %p1276_p10 = pnand %p1275_p2, %p1271_p8 }
 0x1fc   : > { %v632_v60 = vmul.f32 1.442695, %v627_v58  ;;  %v1107_v58 = vld [vmem:[%s1688_s6] ss:$0 sm:$0xff] }
 0x1fd   : > { %v1117_v61 = vpop.eup %1116 }
 0x1fe   : > { %1118 = vpow2.f32 %v632_v60  ;;  %961 = vmatmul.msk.f32.vlgmr.msra.gmra.mxu2 %vm452_vm3, %v1117_v61  ;;  %v638_v31 = vsel %vm452_vm3, %v1117_v61, 0.0 }
 0x200   : > { %v619_v1 = vpop.xlane.xlu2 %618  ;;  %v584_v4 = vpop.xlane.xlu0 %583 }
 0x201   : > { %v624_v2 = vsel %vm1544_vm6, %v619_v1, %v606_v0  ;;  %v603_v7 = vpop.xlane.xlu1 %602  ;;  %v588_v8 = vsel %vm571_vm7, %v584_v4, 0.0 }
 0x202   : > { %v628_v3 = vsub.f32 %v568_v27, %v624_v2  ;;  %v607_v9 = vsel %vm1562_vm14, %v603_v7, %v588_v8 }
 0x204   : > { %v1119_v5 = vpop.eup %1118  ;;  %v634_v6 = vmul.f32 1.442695, %v628_v3 }
 0x205   : > { %v639_v37 = vsel %vm452_vm3, %v1119_v5, 0.0 }
 0x206   : > { %1120 = vpow2.f32 %v634_v6  ;;  %962 = vmatmul.msk.f32.gmra.mxu2 %vm452_vm3, %v1119_v5 }
 0x208   : > { %v621_v10 = vpop.xlane.xlu2 %620 }
 0x209   : > { %v625_v11 = vsel %vm1544_vm6, %v621_v10, %v607_v9 }
 0x20a   : > { %v629_v12 = vsub.f32 %v569_v36, %v625_v11 }
 0x20c   : > { %v1121_v14 = vpop.eup %1120  ;;  %v636_v15 = vmul.f32 1.442695, %v629_v12 }
 0x20d   : > { %v640_v47 = vsel %vm452_vm3, %v1121_v14, 0.0 }
 0x20e   : > { %1122 = vpow2.f32 %v636_v15  ;;  %963 = vmatmul.msk.f32.gmra.mxu2 %vm452_vm3, %v1121_v14 }
 0x214   : > { %v1123_v16 = vpop.eup %1122 }
 0x215   : > { %v641_v53 = vsel %vm452_vm3, %v1123_v16, 0.0 }
 0x216   : > { %964 = vmatmul.msk.f32.gmra.mxu2 %vm452_vm3, %v1123_v16 }
 0x281   : > { %v659_v21 = vpop.f32.mrf.mxu2 }
 0x282   : > { %v671_v22 = vmul.f32 0.25, %v659_v21 }
 0x284   : > { %v675_v23 = vsel %vm452_vm3, %v671_v22, 1.0 }
 0x285   : > { %1124 = vrcp.f32 %v675_v23 }
 0x289   : > { %v662_v24 = vpop.f32.mrf.mxu2 }
 0x28a   : > { %v672_v25 = vmul.f32 0.25, %v662_v24 }
 0x28b   : > { %v1125_v27 = vpop.eup %1124 }
 0x28c   : > { %v676_v26 = vsel %vm452_vm3, %v672_v25, 1.0  ;;  %v683_v33 = vmul.f32 %v1125_v27, %v638_v31 }
 0x28d   : > { %1126 = vrcp.f32 %v676_v26 }
 0x28e   : > { %v691_v32 = vmul.f32 %v687_v34, %v683_v33 }
 0x291   : > { %v665_v29 = vpop.f32.mrf.mxu2 }
 0x292   : > { %v673_v30 = vmul.f32 0.25, %v665_v29 }
 0x293   : > { %v1127_v36 = vpop.eup %1126 }
 0x294   : > { %v684_v38 = vmul.f32 %v1127_v36, %v639_v37  ;;  %v677_v39 = vsel %vm452_vm3, %v673_v30, 1.0 }
 0x295   : > { %1128 = vrcp.f32 %v677_v39 }
 0x296   : > { %v692_v40 = vmul.f32 %v688_v35, %v684_v38 }
 0x298   : > { %v695_v41 = vpack.c.bf16 %v692_v40, %v691_v32 }
 0x299   : > { %v668_v42 = vpop.f32.mrf.mxu2 }
 0x29a   : > { %v674_v43 = vmul.f32 0.25, %v668_v42  ;;  %773 = vmatmul.bf16.vlgmr.msra.gmra.mxu3 %v695_v41 }
 0x29b   : > { %v1129_v45 = vpop.eup %1128 }
 0x29c   : > { %v678_v44 = vsel %vm452_vm3, %v674_v43, 1.0  ;;  %v685_v48 = vmul.f32 %v1129_v45, %v640_v47 }
 0x29d   : > { %1130 = vrcp.f32 %v678_v44 }
 0x29e   : > { %v693_v55 = vmul.f32 %v689_v49, %v685_v48 }
 0x2a3   : > { %v1131_v52 = vpop.eup %1130 }
 0x2a4   : > { %v686_v54 = vmul.f32 %v1131_v52, %v641_v53 }
 0x2a6   : > { %v694_v56 = vmul.f32 %v690_v51, %v686_v54 }
 0x2a8   : > { %v696_v57 = vpack.c.bf16 %v694_v56, %v693_v55 }
 0x2aa   : > { %778 = vmatmul.bf16.gmra.mxu3 %v696_v57 }
 0x31d   : > { %v774_v59 = vpop.f32.mrf.mxu3 }
 0x31e   : > { %v775_v60 = vadd.f32 %v1107_v58, %v774_v59 }
 0x320   : > { %784 = vst [vmem:[%s348_s10] sm:$0xff] %v775_v60 }
 0x325   : > { %v776_v61 = vpop.f32.mrf.mxu3 }
 0x326   : > { %v777_v62 = vadd.f32 %v1107_v58, %v776_v61 }
 0x328   : > { %785 = vst [vmem:[%s348_s10 + $0x8] sm:$0xff] %v777_v62 }
 0x32d   : > { %v779_v50 = vpop.f32.mrf.mxu3 }
 0x32e   : > { %v780_v0 = vadd.f32 %v1107_v58, %v779_v50 }
 0x330   : > { %786 = vst [vmem:[%s348_s10 + $0x10] sm:$0xff] %v780_v0 }
 0x335   : > { %v781_v1 = vpop.f32.mrf.mxu3 }
 0x336   : > { %v782_v2 = vadd.f32 %v1107_v58, %v781_v1 }
 0x338   : > { %787 = vst [vmem:[%s348_s10 + $0x18] sm:$0xff] %v782_v2 }
 0x339   : > { %1279 = shalt.err (!%p1276_p10)
}
 0x33a   : > { %s1335_s23 = smov 128   ;;  %s1336_s10 = smov 8  }
 0x33b   : > { %1036 = dma.vmem_to_hbm [thread:$0]  (%p1465_p3), %s802_s1, 512, %s804_s9, %s789_s30, %s1335_s23, %s1335_s23, %s1336_s10  }
 0x33c PF: > { %s818_s13 = sand.u32 1, %s1314_s24   ;;  %p1706_p12 = scmp.ge.s32.totalorder %s1326_s27, 2 }
 0x33d   : > { %s819_s15 = scalar_lea.sflag [#allocation4], %s818_s13 }
 0x33e   : > { %p1053_p13 = pnand %p1706_p12, %p1412_p6 }
 0x340   : > { %p1054_p0 = pneg %p1053_p13 }
 0x342   : > { %1309 = dma.done.wait (%p1054_p0), %s819_s15, 512  }
 0x343   : > { %1311 = vsyncadd (%p1054_p0), %s819_s15, 4294966784  ;;  %p22_p5 = scmp.ge.s32.totalorder %s1452_s16, 4   ;;  %s1707_s24 = smov %s1318_s25 }
 0x344   : > { %s1708_s25 = smov %s1322_s26  ;;  %s1709_s26 = smov %s1461_s21 }
 0x345   : > { %s1710_s27 = smov %s1452_s16  ;;  %24 = sbr.rel (!%p22_p5) target bundleno = 9 (0x9), region = 105 }
 0x34a   :  { %825 = vsyncpa [#allocation3], 1 }
 0x34b   :  { %827 = vsyncpa [#allocation3 + $0x1], 1 }
 0x34c   :  { %828 = vsyncpa [#allocation6], 1 }
 0x34d   :  { %829 = vsyncpa [#allocation9], 1 }
 0x34e   :  { %830 = vsyncpa [#allocation4], 1 }
 0x34f   :  { %832 = vsyncpa [#allocation4 + $0x1], 1 }

</bundles_post_ra>
